<compile_context>
chip_gen: v6e
topology: v6e:2x2x1
jax: 0.10.0
libtpu: 0.0.40
codegen_flags: <defaults>
</compile_context>

<pallas_src>
import jax
import jax.numpy as jnp
from jax import lax
from jax.experimental import pallas as pl
from jax.experimental.pallas import tpu as pltpu


def _attn_net_kernel(x_ref, w1_ref, b1_ref, w2t_ref, b2_ref, a_ref):
    # x tile: [TILE_N, L] native dtype; cast to bf16 in-kernel (VPU, free slot).
    x = x_ref[...].astype(jnp.bfloat16)
    # First Linear on the MXU with f32 accumulation, bias + tanh in f32 (EUP).
    h = jnp.dot(x, w1_ref[...], preferred_element_type=jnp.float32)   # [TILE_N, D]
    h = jnp.tanh(h + b1_ref[...])                                     # f32
    # TODO(synk): eval-mode only — Dropout is the identity here.
    # Second Linear with the instance axis on lanes: contract D of (C, D)
    # against D of (TILE_N, D)  ->  (C, TILE_N)  (q @ k^T pattern).
    a = lax.dot_general(w2t_ref[...], h,
                        dimension_numbers=(((1,), (1,)), ((), ())),
                        preferred_element_type=jnp.float32)           # [C, TILE_N]
    a_ref[...] = a + b2_ref[...]                                      # lane-dense store


def attn_net_forward(x, w1, b1, w2, b2, *, tile_n=4096):
    """Pallas forward for Attn_Net (eval mode).

    Args:
      x:  [N, L]  (any float dtype; streamed as-is, cast to bf16 in-kernel)
      w1: [L, D]  (transpose of PyTorch Linear.weight [D, L])
      b1: [D]
      w2: [D, C]  (transpose of PyTorch Linear.weight [C, D])
      b2: [C]
      tile_n: rows per grid step (rounded to a multiple of 128).
    Returns:
      (A, x) with A of shape [N, C], matching the PyTorch module.
    """
    N, L = x.shape
    D = w1.shape[1]
    C = w2.shape[1]

    # Row tile: multiple of 128 (lanes of the (C, tile_n) output block and
    # sublanes of the (tile_n, L) x block), floor 128.
    lane = 128
    tile_n = max(lane, (int(tile_n) // lane) * lane)
    # Keep >= 2 row tiles whenever N allows so v7x's second TensorCore gets work.
    half_rounded = (((N + 1) // 2 + lane - 1) // lane) * lane
    tile_n = min(tile_n, max(lane, half_rounded))
    n_tiles = pl.cdiv(N, tile_n)          # ragged last block handled by Pallas

    # Small, one-time parameter reshapes/casts (VMEM-resident across the grid).
    w1_in = w1.astype(jnp.bfloat16)                      # [L, D]   MXU input
    b1_in = b1.reshape(1, D).astype(jnp.float32)         # [1, D]
    w2t_in = jnp.transpose(w2).astype(jnp.float32)       # [C, D]   tiny
    b2_in = b2.reshape(C, 1).astype(jnp.float32)         # [C, 1]

    flops = 2 * N * L * D + 2 * N * D * C
    bytes_accessed = (N * L * x.dtype.itemsize           # x stream (native dtype, once)
                      + L * D * 2                        # w1 bf16 (once)
                      + (C * D + D + C) * 4              # w2^T, b1, b2 f32 (once)
                      + N * C * 4)                       # narrow output writeback

    a_cn = pl.pallas_call(
        _attn_net_kernel,
        out_shape=jax.ShapeDtypeStruct((C, N), jnp.float32),
        grid=(n_tiles,),
        in_specs=[
            pl.BlockSpec((tile_n, L), lambda i: (i, 0)),   # x: streamed row tiles
            pl.BlockSpec((L, D), lambda i: (0, 0)),        # w1: VMEM-resident
            pl.BlockSpec((1, D), lambda i: (0, 0)),        # b1: VMEM-resident
            pl.BlockSpec((C, D), lambda i: (0, 0)),        # w2^T: VMEM-resident
            pl.BlockSpec((C, 1), lambda i: (0, 0)),        # b2: VMEM-resident
        ],
        out_specs=pl.BlockSpec((C, tile_n), lambda i: (0, i)),  # lane-dense on N
        compiler_params=pltpu.CompilerParams(
            dimension_semantics=("parallel",),
            vmem_limit_bytes=48 * 1024 * 1024),
        cost_estimate=pl.CostEstimate(
            flops=flops,
            transcendentals=N * D,
            bytes_accessed=bytes_accessed),
    )(x, w1_in, b1_in, w2t_in, b2_in)

    a = jnp.transpose(a_cn).astype(x.dtype)   # (N, C); tiny layout fixup (N*C*4 B)
    return a, x


if __name__ == "__main__":
    # Small shapes consistent with module defaults (L=512, D=256, n_classes=1).
    # N=300 with tile_n=128 exercises the multi-tile grid AND the ragged last
    # block (300 = 2*128 + 44).
    N, L, D, C = 300, 512, 256, 1

    key = jax.random.PRNGKey(0)
    k_x, k_w1, k_b1, k_w2, k_b2 = jax.random.split(key, 5)

    x = jax.random.normal(k_x, (N, L), dtype=jnp.float32)
    # Deterministic synthetic parameters (PyTorch-style uniform fan-in scaling).
    w1 = jax.random.uniform(k_w1, (L, D), dtype=jnp.float32,
                            minval=-1.0, maxval=1.0) / jnp.sqrt(L).astype(jnp.float32)
    b1 = jax.random.uniform(k_b1, (D,), dtype=jnp.float32,
                            minval=-1.0, maxval=1.0) / jnp.sqrt(L).astype(jnp.float32)
    w2 = jax.random.uniform(k_w2, (D, C), dtype=jnp.float32,
                            minval=-1.0, maxval=1.0) / jnp.sqrt(D).astype(jnp.float32)
    b2 = jax.random.uniform(k_b2, (C,), dtype=jnp.float32,
                            minval=-1.0, maxval=1.0) / jnp.sqrt(D).astype(jnp.float32)

    a_out, x_out = jax.block_until_ready(
        attn_net_forward(x, w1, b1, w2, b2, tile_n=128))

    # Pure-JAX f32 reference (eval-mode forward). Kernel uses bf16 MXU inputs
    # for the first Linear with f32 accumulation -> small, bounded drift.
    h_ref = jnp.tanh(x @ w1 + b1[None, :])
    a_ref = h_ref @ w2 + b2[None, :]

    assert a_out.shape == (N, C)
    assert x_out.shape == (N, L)
    assert jnp.allclose(a_out, a_ref, atol=2e-2, rtol=2e-2), (
        float(jnp.max(jnp.abs(a_out - a_ref))))
    assert jnp.array_equal(x_out, x)

    print("KERNEL_OK")
</pallas_src>

<mosaic_0001>
module attributes {stable_mosaic.version = 11 : i64} {
  func.func @_attn_net_kernel(%arg0: i32, %arg1: memref<128x512xf32, #tpu.memory_space<vmem>>, %arg2: memref<512x256xbf16, #tpu.memory_space<vmem>>, %arg3: memref<1x256xf32, #tpu.memory_space<vmem>>, %arg4: memref<1x256xf32, #tpu.memory_space<vmem>>, %arg5: memref<1x1xf32, #tpu.memory_space<vmem>>, %arg6: memref<1x128xf32, #tpu.memory_space<vmem>>) attributes {dimension_semantics = [#tpu.dimension_semantics<parallel>], iteration_bounds = array<i64: 3>, scalar_prefetch = 0 : i64, scratch_operands = 0 : i64, tpu.core_type = #tpu.core_type<tc>, window_params = [{transform_indices = @transform_0, window_bounds = array<i64: 128, 512>}, {pipeline_mode = #tpu.pipeline_mode<synchronous>, transform_indices = @transform_1, window_bounds = array<i64: 512, 256>}, {pipeline_mode = #tpu.pipeline_mode<synchronous>, transform_indices = @transform_2, window_bounds = array<i64: 1, 256>}, {pipeline_mode = #tpu.pipeline_mode<synchronous>, transform_indices = @transform_3, window_bounds = array<i64: 1, 256>}, {pipeline_mode = #tpu.pipeline_mode<synchronous>, transform_indices = @transform_4, window_bounds = array<i64: 1, 1>}, {transform_indices = @transform_5, window_bounds = array<i64: 1, 128>}]} {
    %c0 = arith.constant 0 : index
    %c0_0 = arith.constant 0 : index
    %0 = vector.load %arg1[%c0, %c0_0] : memref<128x512xf32, #tpu.memory_space<vmem>>, vector<128x512xf32>
    %1 = arith.truncf %0 : vector<128x512xf32> to vector<128x512xbf16>
    %c0_1 = arith.constant 0 : index
    %c0_2 = arith.constant 0 : index
    %2 = vector.load %arg2[%c0_1, %c0_2] : memref<512x256xbf16, #tpu.memory_space<vmem>>, vector<512x256xbf16>
    %cst = arith.constant dense<0.000000e+00> : vector<128x256xf32>
    %3 = tpu.matmul %1, %2, %cst {dimension_numbers = #tpu.dot_dimension_numbers<[1], [0], [0], [1], [0, 0, 1, 1], [], []>} : vector<128x512xbf16>, vector<512x256xbf16>, vector<128x256xf32> -> vector<128x256xf32>
    %c0_3 = arith.constant 0 : index
    %c0_4 = arith.constant 0 : index
    %4 = vector.load %arg3[%c0_3, %c0_4] : memref<1x256xf32, #tpu.memory_space<vmem>>, vector<1x256xf32>
    %5 = vector.broadcast %4 : vector<1x256xf32> to vector<128x256xf32>
    %6 = arith.addf %3, %5 : vector<128x256xf32>
    %7 = math.tanh %6 : vector<128x256xf32>
    %c0_5 = arith.constant 0 : index
    %c0_6 = arith.constant 0 : index
    %8 = vector.load %arg4[%c0_5, %c0_6] : memref<1x256xf32, #tpu.memory_space<vmem>>, vector<1x256xf32>
    %cst_7 = arith.constant dense<0.000000e+00> : vector<1x128xf32>
    %9 = tpu.matmul %8, %7, %cst_7 {dimension_numbers = #tpu.dot_dimension_numbers<[1], [1], [0], [0], [0, 0, 1, 0], [], []>} : vector<1x256xf32>, vector<128x256xf32>, vector<1x128xf32> -> vector<1x128xf32>
    %c0_8 = arith.constant 0 : index
    %c0_9 = arith.constant 0 : index
    %10 = vector.load %arg5[%c0_8, %c0_9] : memref<1x1xf32, #tpu.memory_space<vmem>>, vector<1x1xf32>
    %11 = vector.broadcast %10 : vector<1x1xf32> to vector<1x128xf32>
    %12 = arith.addf %9, %11 : vector<1x128xf32>
    %c0_10 = arith.constant 0 : index
    %c0_11 = arith.constant 0 : index
    %13 = vector.load %arg6[%c0_10, %c0_11] : memref<1x128xf32, #tpu.memory_space<vmem>>, vector<1x128xf32>
    tpu.vector_store %arg6[%c0_10, %c0_11], %12 {strides = array<i32>} : memref<1x128xf32, #tpu.memory_space<vmem>>, vector<1x128xf32>,
    return
  }
  func.func @transform_0(%arg0: i32) -> (i32, i32) {
    %c0_i32 = arith.constant 0 : i32
    %c0_i32_0 = arith.constant 0 : i32
    return %arg0, %c0_i32 : i32, i32
  }
  func.func @transform_1(%arg0: i32) -> (i32, i32) {
    %c0_i32 = arith.constant 0 : i32
    %c0_i32_0 = arith.constant 0 : i32
    %c0_i32_1 = arith.constant 0 : i32
    return %c0_i32, %c0_i32_0 : i32, i32
  }
  func.func @transform_2(%arg0: i32) -> (i32, i32) {
    %c0_i32 = arith.constant 0 : i32
    %c0_i32_0 = arith.constant 0 : i32
    %c0_i32_1 = arith.constant 0 : i32
    return %c0_i32, %c0_i32_0 : i32, i32
  }
  func.func @transform_3(%arg0: i32) -> (i32, i32) {
    %c0_i32 = arith.constant 0 : i32
    %c0_i32_0 = arith.constant 0 : i32
    %c0_i32_1 = arith.constant 0 : i32
    return %c0_i32, %c0_i32_0 : i32, i32
  }
  func.func @transform_4(%arg0: i32) -> (i32, i32) {
    %c0_i32 = arith.constant 0 : i32
    %c0_i32_0 = arith.constant 0 : i32
    %c0_i32_1 = arith.constant 0 : i32
    return %c0_i32, %c0_i32_0 : i32, i32
  }
  func.func @transform_5(%arg0: i32) -> (i32, i32) {
    %c0_i32 = arith.constant 0 : i32
    %c0_i32_0 = arith.constant 0 : i32
    return %c0_i32, %arg0 : i32, i32
  }
}

</mosaic_0001>

<bundles_post_ra>
// kernel: tpu_custom_call.1
= control target key start
LH: loop header
LB: loop body
LE: loop exit
PB: predicated region body
PF: predicated region fallthrough
CT: control target
= control target key end

     0   :  { %s2034_s0 = inlined_call_operand.hbm [shape: f32[300,512], index: 0, kind: input, shape index: {}]   ;;  %s2035_s1 = inlined_call_operand.hbm [shape: bf16[512,256], index: 1, kind: input, shape index: {}]   ;;  %s2036_s2 = inlined_call_operand.vmem [shape: f32[1,256], index: 2, kind: input, shape index: {}]   ;;  %s2037_s3 = inlined_call_operand.vmem [shape: f32[1,256], index: 3, kind: input, shape index: {}]   ;;  %s2038_s4 = inlined_call_operand.<no memory space> [shape: f32[1,1], index: 4, kind: input, shape index: {}]   ;;  %s2039_s5 = inlined_call_operand.hbm [shape: f32[1,300], index: 5, kind: output, shape index: {}]  }
   0x1   :  { %v10_v0 = vstv %s2038_s4 }
   0x2   :  { %11 = vst [vmem:[#allocation2] sm:$0x1] %v10_v0 }
   0x3   :  { %12 = vsyncpa [#allocation4], 0 }
   0x4   :  { %14 = vsyncpa [#allocation4 + $0x1], 0 }
   0x5   :  { %15 = vsyncpa [#allocation7], 0 }
   0x6   :  { %16 = vsyncpa [#allocation5], 0 }
   0x7   :  { %18 = vsyncpa [#allocation5 + $0x1], 0  ;;  %s1671_s20 = smov 0   ;;  %s1673_s21 = smov 0  }
   0x8   :  { %s1675_s22 = smov 0   ;;  %s1677_s23 = smov 0  }
   0x9 LB: > { %s1692_s4 = sadd.s32 4294967295, %s1628_s23   ;;  %s1205_s24 = sadd.s32 4294967294, %s1628_s23   ;;  %s1628_s23 = sphi %s1677_s23, %s2053_s23   ;;  %s1624_s22 = sphi %s1675_s22, %s2052_s22   ;;  %s1620_s21 = sphi %s1673_s21, %s2051_s21   ;;  %s1616_s20 = sphi %s1671_s20, %s2050_s20  }
   0xa   : > { %s1696_s25 = sadd.s32 1, %s1628_s23   ;;  %s31_s26 = sadd.s32 1, %s1624_s22 }
   0xb   : > { %s28_s27 = ssub.s32 %s1628_s23, %s1696_s25  ;;  %p38_p0 = scmp.ne.s32.totalorder %s1624_s22, %s1620_s21 }
   0xc   : > { %p29_p1 = scmp.eq.s32.totalorder %s28_s27, 0  ;;  %p39_p2 = scmp.eq.s32.totalorder %s1628_s23, 0 }
   0xd   : > { %p44_p3 = scmp.ne.s32.totalorder %s1620_s21, %s1616_s20  ;;  %p45_p4 = scmp.eq.s32.totalorder %s1692_s4, 0 }
   0xe   : > { %s1708_s28 = scalar_select %p29_p1, %s1624_s22, %s31_s26  }
   0xf   : > { %p1710_p5 = por %p39_p2, %p38_p0  ;;  %p1716_p6 = por %p45_p4, %p44_p3 }
  0x10   : > { %p152_p7 = scmp.eq.s32.totalorder %s1692_s4, 2  ;;  %p158_p8 = scmp.eq.s32.totalorder %s1205_s24, 2 }
  0x11   : > { %s2043_s30 = scalar_select %p1716_p6, 1, 0 }
  0x12   : > { %p1206_p9 = scmp.ge.s32.totalorder %s1628_s23, 1  ;;  %p165_p10 = scmp.lt.s32.totalorder %s1628_s23, 4 }
  0x13   : > { %p1723_p11 = por %p152_p7, %p38_p0  ;;  %p1727_p12 = por %p158_p8, %p44_p3 }
  0x14   : > { %p1731_p13 = pnand %p1206_p9, %p165_p10  ;;  %s1630_s9 = smov [#allocation6]  }
  0x15   : > { %s2044_s6 = scalar_select %p1723_p11, 1, 0 }
  0x16   : > { %s2045_s7 = scalar_select %p1727_p12, 1, 0 }
  0x17   : > { %p1298_p1 = pneg %p1731_p13  ;;  %s177_s10 = sshll.u32 %s1630_s9, 4  ;;  %s178_s10 = int_to_ptr.vmem [resolvable:$true] %s177_s10 }
  0x18   : > { %s1519_s11 = scalar_lea.vmem %s178_s10, 8192  ;;  %p1527_p8 = scmp.lt.s32.totalorder %s178_s10, %s178_s10 }
  0x19   : > { %p1299_p2 = pnand %p1298_p1, %p45_p4  ;;  %p1520_p7 = scmp.ne.s32.totalorder %s178_s10, %s1519_s11 }
  0x1a   : > { %p1528_p6 = scmp.lt.s32.totalorder %s1519_s11, %s1519_s11 }
  0x1b   : > { %p1510_p0 = pneg %p1299_p2 }
  0x1c   : > { %p1529_p12 = por %p1528_p6, %p1527_p8 }
  0x1d   : > { %p1522_p11 = pnand %p1520_p7, %p1510_p0 }
  0x1f   : > { %p1523_p3 = pneg %p1522_p11 }
  0x21   : > { %p1530_p9 = pnand %p1529_p12, %p1523_p3 }
  0x23   : > { %1533 = shalt.err (!%p1530_p9)
}
  0x24   : > { %s1631_s12 = smov 128   ;;  %s1632_s13 = smov 8  }
  0x25   : > { %1301 = dma.hbm_to_vmem [thread:$0]  (!%p1299_p2), %s2035_s1, 8192, %s178_s10, [#allocation7], %s1631_s12, %s1631_s12, %s1632_s13  }
  0x26   : > { %p1208_p10 = scmp.ge.s32.totalorder %s1628_s23, 3 }
  0x28   : > { %196 = sbr.rel (%p1208_p10) target bundleno = 77 (0x4d), region = 32 }
  0x2d   : > { %199 = sbr.rel (!%p1710_p5) target bundleno = 77 (0x4d), region = 36  ;;  %s200_s16 = sand.u32 (%p1710_p5), 1, %s1624_s22  }
  0x2e   : > { %s1210_s17 = sshll.u32 (%p1710_p5), %s1628_s23, 4  ;;  %s1209_s18 = sshll.u32 (%p1710_p5), %s200_s16, 9 }
  0x2f   : > { %s206_s19 = ssub.s32 (%p1710_p5), 38, %s1210_s17  ;;  %s1750_s27 = scalar_lea.sflag (%p1710_p5), [#allocation4], %s200_s16 }
  0x30   : > { %p207_p6 = scmp.lt.s32.totalorder (%p1710_p5), %s206_s19, 16  ;;  %s204_s9 = scalar_lea.vmem (%p1710_p5), [#allocation3], %s1209_s18 }
  0x32   : > { %s2055_s19 = smov (!%p207_p6, %s206_s19), 16 }
  0x33   : > { %s1747_s24 = sshll.u32 %s2055_s19, 9 }
  0x34   : > { %s212_s26 = ssub.s32 8192, %s1747_s24 }
  0x35   : > { %213 = vsyncadd %s1750_s27, %s212_s26  ;;  %p1213_p5 = scmp.ne.s32.totalorder %s1747_s24, 0  ;;  %s1290_s29 = sshll.u32 %s1628_s23, 13 }
  0x36   : > { %s1758_s12 = scalar_lea.hbm %s2034_s0, %s1290_s29  ;;  %s219_s13 = sshll.u32 %s204_s9, 4  ;;  %s1760_s13 = int_to_ptr.vmem [resolvable:$true] %s219_s13 }
  0x37   : > { %s1534_s14 = scalar_lea.hbm %s1758_s12, %s1747_s24  ;;  %s1538_s17 = scalar_lea.hbm %s2034_s0, 19456 }
  0x38   : > { %p1535_p11 = scmp.ne.s32.totalorder %s1758_s12, %s1534_s14  ;;  %p1539_p2 = scmp.lt.s32.totalorder %s1758_s12, %s2034_s0 }
  0x39   : > { %p1540_p0 = scmp.lt.s32.totalorder %s1538_s17, %s1534_s14 }
  0x3a   : > { %p1536_p12 = pnand %p1535_p11, %p1213_p5 }
  0x3b   : > { %p1541_p7 = por %p1540_p0, %p1539_p2 }
  0x3c   : > { %p1537_p1 = pneg %p1536_p12 }
  0x3e   : > { %p1542_p3 = pnand %p1541_p7, %p1537_p1 }
  0x40   : > { %1545 = shalt.err (!%p1542_p3)
}
  0x41   : > { %s1546_s26 = scalar_lea.vmem %s1760_s13, %s1747_s24  ;;  %s1633_s9 = smov [#allocation3]  }
  0x42   : > { %p1547_p8 = scmp.ne.s32.totalorder %s1760_s13, %s1546_s26  ;;  %s1550_s29 = sshll.u32 %s1633_s9, 4  ;;  %s1551_s29 = int_to_ptr.vmem [resolvable:$false] %s1550_s29 }
  0x43   : > { %s1552_s10 = scalar_lea.vmem %s1551_s29, 16384  ;;  %p1553_p6 = scmp.lt.s32.totalorder %s1760_s13, %s1551_s29 }
  0x44   : > { %p1548_p9 = pnand %p1547_p8, %p1213_p5  ;;  %p1554_p11 = scmp.lt.s32.totalorder %s1552_s10, %s1546_s26 }
  0x46   : > { %p1549_p10 = pneg %p1548_p9  ;;  %p1555_p12 = por %p1554_p11, %p1553_p6 }
  0x48   : > { %p1556_p2 = pnand %p1555_p12, %p1549_p10 }
  0x4a   : > { %1559 = shalt.err (!%p1556_p2)
}
  0x4b   : > { %s1634_s11 = smov 512   ;;  %s1635_s14 = smov 32  }
  0x4c   : > { %225 = dma.hbm_to_vmem [thread:$0]  (%p1213_p5), %s1758_s12, %s1747_s24, %s1760_s13, %s1750_s27, %s1634_s11, %s1634_s11, %s1635_s14  }
  0x4d PF: > { %231 = sbr.rel (%p1731_p13) target bundleno = 695 (0x2b7), region = 40  ;;  %s1789_s15 = sand.u32 (!%p1731_p13), 1, %s1620_s21  }
  0x4e   : > { %s1219_s16 = sshll.u32 (!%p1731_p13), %s1789_s15, 9  ;;  %s234_s17 = scalar_lea.sflag (!%p1731_p13), [#allocation4], %s1789_s15 }
  0x4f   : > { %s1793_s18 = scalar_lea.vmem (!%p1731_p13), [#allocation3], %s1219_s16  ;;  %p2047_p1 = scmp.ne.s32.totalorder (!%p1731_p13), %s2043_s30, 0 }
  0x52   : > { %1603 = dma.done.wait (%p2047_p1), %s234_s17, 8192  }
  0x53   : > { %1605 = vsyncadd (%p2047_p1), %s234_s17, 4294959104 }
  0x54   : > { %1607 = dma.done.wait (%p45_p4), [#allocation7], 8192  }
  0x55   : > { %1609 = vsyncadd (%p45_p4), [#allocation7], 4294959104  ;;  %v1348_v1 = vld [vmem:[#allocation6 + $0x74] ss:$8 sps:$4 sm:$0xff]   ;;  %v1352_v3 = vld [vmem:[#allocation6 + $0x70] ss:$8 sps:$4 sm:$0xff]  }
  0x56   : > { %v1350_v2 = vld [vmem:[#allocation6 + $0x174] ss:$8 sps:$4 sm:$0xff]   ;;  %765 = vmatprep.subr.bf16.mxu0 %v1348_v1  ;;  %v1353_v4 = vld [vmem:[#allocation6 + $0x170] ss:$8 sps:$4 sm:$0xff]   ;;  %v1354_v5 = vld [vmem:[#allocation6 + $0x64] ss:$8 sps:$4 sm:$0xff]  }
  0x57   : > { %878 = vmatprep.subr.bf16.mxu1 %v1350_v2  ;;  %766 = vmatpush1.bf16.msra.mxu0 %v1352_v3  ;;  %v1356_v6 = vld [vmem:[#allocation6 + $0x164] ss:$8 sps:$4 sm:$0xff]   ;;  %v1358_v7 = vld [vmem:[#allocation6 + $0x60] ss:$8 sps:$4 sm:$0xff]   ;;  %v1360_v9 = vld [vmem:[#allocation6 + $0x54] ss:$8 sps:$4 sm:$0xff]  }
  0x58   : > { %879 = vmatpush1.bf16.msra.mxu1 %v1353_v4  ;;  %767 = vmatprep.subr.bf16.mxu0 %v1354_v5  ;;  %v1359_v8 = vld [vmem:[#allocation6 + $0x160] ss:$8 sps:$4 sm:$0xff]   ;;  %v1362_v10 = vld [vmem:[#allocation6 + $0x154] ss:$8 sps:$4 sm:$0xff]   ;;  %v1364_v11 = vld [vmem:[#allocation6 + $0x50] ss:$8 sps:$4 sm:$0xff]  }
  0x59   : > { %880 = vmatprep.subr.bf16.mxu1 %v1356_v6  ;;  %v1365_v12 = vld [vmem:[#allocation6 + $0x150] ss:$8 sps:$4 sm:$0xff]   ;;  %v1366_v13 = vld [vmem:[#allocation6 + $0x44] ss:$8 sps:$4 sm:$0xff]   ;;  %v1370_v15 = vld [vmem:[#allocation6 + $0x40] ss:$8 sps:$4 sm:$0xff]  }
  0x5a   : > { %v1368_v14 = vld [vmem:[#allocation6 + $0x144] ss:$8 sps:$4 sm:$0xff]   ;;  %v1371_v16 = vld [vmem:[#allocation6 + $0x140] ss:$8 sps:$4 sm:$0xff]   ;;  %v1372_v17 = vld [vmem:[#allocation6 + $0x34] ss:$8 sps:$4 sm:$0xff]  }
  0x5b   : > { %768 = vmatpush1.bf16.msra.mxu0 %v1358_v7  ;;  %v1374_v18 = vld [vmem:[#allocation6 + $0x134] ss:$8 sps:$4 sm:$0xff]   ;;  %v1376_v19 = vld [vmem:[#allocation6 + $0x30] ss:$8 sps:$4 sm:$0xff]   ;;  %v1378_v21 = vld [vmem:[#allocation6 + $0x24] ss:$8 sps:$4 sm:$0xff]  }
  0x5c   : > { %881 = vmatpush1.bf16.msra.mxu1 %v1359_v8  ;;  %769 = vmatprep.subr.bf16.mxu0 %v1360_v9  ;;  %v1377_v20 = vld [vmem:[#allocation6 + $0x130] ss:$8 sps:$4 sm:$0xff]   ;;  %v1380_v22 = vld [vmem:[#allocation6 + $0x124] ss:$8 sps:$4 sm:$0xff]   ;;  %v1382_v23 = vld [vmem:[#allocation6 + $0x20] ss:$8 sps:$4 sm:$0xff]  }
  0x5d   : > { %882 = vmatprep.subr.bf16.mxu1 %v1362_v10  ;;  %v1383_v24 = vld [vmem:[#allocation6 + $0x120] ss:$8 sps:$4 sm:$0xff]   ;;  %v1384_v25 = vld [vmem:[#allocation6 + $0x14] ss:$8 sps:$4 sm:$0xff]   ;;  %v1388_v27 = vld [vmem:[#allocation6 + $0x10] ss:$8 sps:$4 sm:$0xff]  }
  0x5e   : > { %v1386_v26 = vld [vmem:[#allocation6 + $0x114] ss:$8 sps:$4 sm:$0xff]   ;;  %v1389_v28 = vld [vmem:[#allocation6 + $0x110] ss:$8 sps:$4 sm:$0xff]   ;;  %v1390_v29 = vld [vmem:[#allocation6 + $0x4] ss:$8 sps:$4 sm:$0xff]  }
  0x5f   : > { %770 = vmatpush1.bf16.msra.mxu0 %v1364_v11  ;;  %v1392_v30 = vld [vmem:[#allocation6 + $0x104] ss:$8 sps:$4 sm:$0xff]   ;;  %v1394_v31 = vld [vmem:[#allocation6] ss:$8 sps:$4 sm:$0xff]   ;;  %v1396_v33 = vld [vmem:[#allocation6 + $0xf4] ss:$8 sps:$4 sm:$0xff]  }
  0x60   : > { %883 = vmatpush1.bf16.msra.mxu1 %v1365_v12  ;;  %771 = vmatprep.subr.bf16.mxu0 %v1366_v13  ;;  %v1395_v32 = vld [vmem:[#allocation6 + $0x100] ss:$8 sps:$4 sm:$0xff]   ;;  %v1398_v34 = vld [vmem:[#allocation6 + $0x1f4] ss:$8 sps:$4 sm:$0xff]   ;;  %v1400_v35 = vld [vmem:[#allocation6 + $0xf0] ss:$8 sps:$4 sm:$0xff]  }
  0x61   : > { %884 = vmatprep.subr.bf16.mxu1 %v1368_v14  ;;  %v1401_v36 = vld [vmem:[#allocation6 + $0x1f0] ss:$8 sps:$4 sm:$0xff]   ;;  %v1402_v37 = vld [vmem:[#allocation6 + $0xe4] ss:$8 sps:$4 sm:$0xff]   ;;  %v1406_v39 = vld [vmem:[#allocation6 + $0xe0] ss:$8 sps:$4 sm:$0xff]  }
  0x62   : > { %v1404_v38 = vld [vmem:[#allocation6 + $0x1e4] ss:$8 sps:$4 sm:$0xff]   ;;  %v1407_v40 = vld [vmem:[#allocation6 + $0x1e0] ss:$8 sps:$4 sm:$0xff]   ;;  %v1408_v41 = vld [vmem:[#allocation6 + $0xd4] ss:$8 sps:$4 sm:$0xff]  }
  0x63   : > { %772 = vmatpush1.bf16.msra.mxu0 %v1370_v15  ;;  %v1410_v42 = vld [vmem:[#allocation6 + $0x1d4] ss:$8 sps:$4 sm:$0xff]   ;;  %v1412_v43 = vld [vmem:[#allocation6 + $0xd0] ss:$8 sps:$4 sm:$0xff]   ;;  %v1414_v45 = vld [vmem:[#allocation6 + $0xc4] ss:$8 sps:$4 sm:$0xff]  }
  0x64   : > { %885 = vmatpush1.bf16.msra.mxu1 %v1371_v16  ;;  %773 = vmatprep.subr.bf16.mxu0 %v1372_v17  ;;  %v1413_v44 = vld [vmem:[#allocation6 + $0x1d0] ss:$8 sps:$4 sm:$0xff]   ;;  %v1416_v46 = vld [vmem:[#allocation6 + $0x1c4] ss:$8 sps:$4 sm:$0xff]   ;;  %v1418_v51 = vld [vmem:[#allocation6 + $0xc0] ss:$8 sps:$4 sm:$0xff]  }
  0x65   : > { %886 = vmatprep.subr.bf16.mxu1 %v1374_v18  ;;  %v274_v47 = vld [vmem:[%s1793_s18 + $0x8] sm:$0xff]  ;;  %v276_v49 = vld [vmem:[%s1793_s18 + $0x18] sm:$0xff]  ;;  %v273_v7 = vld [vmem:[%s1793_s18] sm:$0xff]  ;;  %s1285_s12 = sshll.u32 %s1692_s4, 4  ;;  %s266_s13 = scalar_lea.vmem [#allocation8], %s1789_s15 }
  0x66   : > { %v278_v48 = vld [vmem:[%s1793_s18 + $0x28] sm:$0xff]  ;;  %v280_v50 = vld [vmem:[%s1793_s18 + $0x38] sm:$0xff]  ;;  %v277_v8 = vld [vmem:[%s1793_s18 + $0x20] sm:$0xff]  ;;  %s1129_s19 = sshll.u32 %s266_s13, 4  ;;  %s1998_s29 = scalar_lea.hbm %s2039_s5, %s1285_s12  ;;  %s1130_s19 = int_to_ptr.vmem [resolvable:$true] %s1129_s19 }
  0x67   : > { %774 = vmatpush1.bf16.msra.mxu0 %v1376_v19  ;;  %v1419_v52 = vld [vmem:[#allocation6 + $0x1c0] ss:$8 sps:$4 sm:$0xff]   ;;  %v338_v53 = vpack.c.bf16 %v278_v48, %v274_v47  ;;  %v340_v54 = vpack.c.bf16 %v280_v50, %v276_v49  ;;  %v1420_v55 = vld [vmem:[#allocation6 + $0xb4] ss:$8 sps:$4 sm:$0xff]   ;;  %v1424_v57 = vld [vmem:[#allocation6 + $0xb0] ss:$8 sps:$4 sm:$0xff]   ;;  %v337_v15 = vpack.c.bf16 %v277_v8, %v273_v7 }
  0x68   : > { %887 = vmatpush1.bf16.msra.mxu1 %v1377_v20  ;;  %775 = vmatprep.subr.bf16.mxu0 %v1378_v21  ;;  %v1422_v56 = vld [vmem:[#allocation6 + $0x1b4] ss:$8 sps:$4 sm:$0xff]   ;;  %v1425_v58 = vld [vmem:[#allocation6 + $0x1b0] ss:$8 sps:$4 sm:$0xff]   ;;  %v1426_v59 = vld [vmem:[#allocation6 + $0xa4] ss:$8 sps:$4 sm:$0xff]  }
  0x69   : > { %888 = vmatprep.subr.bf16.mxu1 %v1380_v22  ;;  %797 = vmatprep.mubr.bf16.mxu0 %v338_v53  ;;  %v1428_v60 = vld [vmem:[#allocation6 + $0x1a4] ss:$8 sps:$4 sm:$0xff]   ;;  %v1430_v61 = vld [vmem:[#allocation6 + $0xa0] ss:$8 sps:$4 sm:$0xff]   ;;  %v1432_v63 = vld [vmem:[#allocation6 + $0x94] ss:$8 sps:$4 sm:$0xff]  }
  0x6a   : > { %910 = vmatprep.mubr.bf16.mxu1 %v340_v54  ;;  %v1431_v62 = vld [vmem:[#allocation6 + $0x1a0] ss:$8 sps:$4 sm:$0xff]   ;;  %v1434_v0 = vld [vmem:[#allocation6 + $0x194] ss:$8 sps:$4 sm:$0xff]   ;;  %v1436_v1 = vld [vmem:[#allocation6 + $0x90] ss:$8 sps:$4 sm:$0xff]  }
  0x6b   : > { %776 = vmatpush1.bf16.msra.mxu0 %v1382_v23  ;;  %v1437_v2 = vld [vmem:[#allocation6 + $0x190] ss:$8 sps:$4 sm:$0xff]   ;;  %v1438_v3 = vld [vmem:[#allocation6 + $0x84] ss:$8 sps:$4 sm:$0xff]   ;;  %v1442_v5 = vld [vmem:[#allocation6 + $0x80] ss:$8 sps:$4 sm:$0xff]  }
  0x6c   : > { %889 = vmatpush1.bf16.msra.mxu1 %v1383_v24  ;;  %777 = vmatprep.subr.bf16.mxu0 %v1384_v25  ;;  %v1440_v4 = vld [vmem:[#allocation6 + $0x184] ss:$8 sps:$4 sm:$0xff]   ;;  %v1443_v6 = vld [vmem:[#allocation6 + $0x180] ss:$8 sps:$4 sm:$0xff]   ;;  %v275_v9 = vld [vmem:[%s1793_s18 + $0x10] sm:$0xff]  ;;  %s1117_s10 = scalar_lea.sflag [#allocation5], %s1789_s15 }
  0x6d   : > { %890 = vmatprep.subr.bf16.mxu1 %v1386_v26  ;;  %v279_v10 = vld [vmem:[%s1793_s18 + $0x30] sm:$0xff]  ;;  %v282_v11 = vld [vmem:[%s1793_s18 + $0x48] sm:$0xff]  ;;  %v284_v13 = vld [vmem:[%s1793_s18 + $0x58] sm:$0xff]  ;;  %s1560_s11 = scalar_lea.vmem %s1130_s19, 16  ;;  %p2048_p13 = scmp.ne.s32.totalorder %s2044_s6, 0 }
  0x6e   : > { %v286_v12 = vld [vmem:[%s1793_s18 + $0x68] sm:$0xff]  ;;  %v288_v14 = vld [vmem:[%s1793_s18 + $0x78] sm:$0xff]  ;;  %v339_v16 = vpack.c.bf16 %v279_v10, %v275_v9  ;;  %v281_v19 = vld [vmem:[%s1793_s18 + $0x40] sm:$0xff]  ;;  %p1561_p4 = scmp.ne.s32.totalorder %s1130_s19, %s1560_s11  ;;  %s1637_s14 = smov [#allocation8]  }
  0x6f   : > { %778 = vmatpush1.bf16.msra.mxu0 %v1388_v27  ;;  %v342_v17 = vpack.c.bf16 %v286_v12, %v282_v11  ;;  %v344_v18 = vpack.c.bf16 %v288_v14, %v284_v13  ;;  %v285_v20 = vld [vmem:[%s1793_s18 + $0x60] sm:$0xff]  ;;  %v283_v21 = vld [vmem:[%s1793_s18 + $0x50] sm:$0xff]  ;;  %v290_v23 = vld [vmem:[%s1793_s18 + $0x88] sm:$0xff]  ;;  %s1564_s4 = sshll.u32 %s1637_s14, 4  ;;  %s1565_s4 = int_to_ptr.vmem [resolvable:$false] %s1564_s4 }
  0x70   : > { %891 = vmatpush1.bf16.msra.mxu1 %v1389_v28  ;;  %779 = vmatprep.subr.bf16.mxu0 %v1390_v29  ;;  %v287_v22 = vld [vmem:[%s1793_s18 + $0x70] sm:$0xff]  ;;  %v294_v24 = vld [vmem:[%s1793_s18 + $0xa8] sm:$0xff]  ;;  %v292_v25 = vld [vmem:[%s1793_s18 + $0x98] sm:$0xff]  ;;  %v341_v27 = vpack.c.bf16 %v285_v20, %v281_v19  ;;  %p1562_p5 = pnand %p1561_p4, %p2048_p13  ;;  %s1566_s16 = scalar_lea.vmem %s1565_s4, 32 }
  0x71   : > { %892 = vmatprep.subr.bf16.mxu1 %v1392_v30  ;;  %v296_v26 = vld [vmem:[%s1793_s18 + $0xb8] sm:$0xff]  ;;  %v343_v28 = vpack.c.bf16 %v287_v22, %v283_v21  ;;  %v346_v29 = vpack.c.bf16 %v294_v24, %v290_v23  ;;  %v306_v47 = vld [vmem:[%s1793_s18 + $0x108] sm:$0xff]  ;;  %p1567_p7 = scmp.lt.s32.totalorder %s1130_s19, %s1565_s4  ;;  %p1568_p3 = scmp.lt.s32.totalorder %s1566_s16, %s1560_s11 }
  0x72   : > { %v348_v30 = vpack.c.bf16 %v296_v26, %v292_v25  ;;  %v310_v48 = vld [vmem:[%s1793_s18 + $0x128] sm:$0xff]  ;;  %v308_v49 = vld [vmem:[%s1793_s18 + $0x118] sm:$0xff]  ;;  %p1563_p0 = pneg %p1562_p5 }
  0x73   : > { %780 = vmatpush1.bf16.msra.mxu0 %v1394_v31  ;;  %v289_v31 = vld [vmem:[%s1793_s18 + $0x80] sm:$0xff]  ;;  %v312_v50 = vld [vmem:[%s1793_s18 + $0x138] sm:$0xff]  ;;  %v354_v53 = vpack.c.bf16 %v310_v48, %v306_v47  ;;  %v322_v7 = vld [vmem:[%s1793_s18 + $0x188] sm:$0xff]  ;;  %p1569_p8 = por %p1568_p3, %p1567_p7 }
  0x74   : > { %893 = vmatpush1.bf16.msra.mxu1 %v1395_v32  ;;  %781 = vmatprep.subr.bf16.mxu0 %v1396_v33  ;;  %v293_v32 = vld [vmem:[%s1793_s18 + $0xa0] sm:$0xff]  ;;  %v291_v33 = vld [vmem:[%s1793_s18 + $0x90] sm:$0xff]  ;;  %v356_v54 = vpack.c.bf16 %v312_v50, %v308_v49  ;;  %v326_v8 = vld [vmem:[%s1793_s18 + $0x1a8] sm:$0xff] }
  0x75   : > { %894 = vmatprep.subr.bf16.mxu1 %v1398_v34  ;;  %v295_v34 = vld [vmem:[%s1793_s18 + $0xb0] sm:$0xff]  ;;  %v324_v9 = vld [vmem:[%s1793_s18 + $0x198] sm:$0xff]  ;;  %v362_v13 = vpack.c.bf16 %v326_v8, %v322_v7  ;;  %v330_v19 = vld [vmem:[%s1793_s18 + $0x1c8] sm:$0xff]  ;;  %p1570_p9 = pnand %p1569_p8, %p1563_p0 }
  0x76   : > { %v328_v10 = vld [vmem:[%s1793_s18 + $0x1b8] sm:$0xff]  ;;  %v334_v20 = vld [vmem:[%s1793_s18 + $0x1e8] sm:$0xff] }
  0x77   : > { %782 = vmatpush2.bf16.msra.mxu0 %v1400_v35  ;;  %v298_v35 = vld [vmem:[%s1793_s18 + $0xc8] sm:$0xff]  ;;  %v364_v14 = vpack.c.bf16 %v328_v10, %v324_v9  ;;  %v332_v21 = vld [vmem:[%s1793_s18 + $0x1d8] sm:$0xff]  ;;  %v366_v25 = vpack.c.bf16 %v334_v20, %v330_v19 }
  0x78   : > { %895 = vmatpush2.bf16.msra.mxu1 %v1401_v36  ;;  %783 = vmatprep.subr.bf16.mxu0 %v1402_v37  ;;  %v302_v36 = vld [vmem:[%s1793_s18 + $0xe8] sm:$0xff]  ;;  %v300_v37 = vld [vmem:[%s1793_s18 + $0xd8] sm:$0xff] }
  0x79   : > { %896 = vmatprep.subr.bf16.mxu1 %v1404_v38  ;;  %v304_v38 = vld [vmem:[%s1793_s18 + $0xf8] sm:$0xff] }
  0x7a   : > { %v336_v22 = vld [vmem:[%s1793_s18 + $0x1f8] sm:$0xff] }
  0x7b   : > { %784 = vmatpush2.bf16.msra.mxu0 %v1406_v39  ;;  %v345_v39 = vpack.c.bf16 %v293_v32, %v289_v31  ;;  %v368_v26 = vpack.c.bf16 %v336_v22, %v332_v21 }
  0x7c   : > { %897 = vmatpush2.bf16.msra.mxu1 %v1407_v40  ;;  %785 = vmatprep.subr.bf16.mxu0 %v1408_v41  ;;  %v347_v40 = vpack.c.bf16 %v295_v34, %v291_v33  ;;  %v350_v41 = vpack.c.bf16 %v302_v36, %v298_v35  ;;  %v435_v33 = vlaneseq  ;;  %v433_v36 = vld [vmem:[%s2036_s2] sm:$0x3] }
  0x7d   : > { %898 = vmatprep.subr.bf16.mxu1 %v1410_v42  ;;  %v352_v42 = vpack.c.bf16 %v304_v38, %v300_v37 }
  0x7e   : > { %v436_v34 = vshrl.u32 %v435_v33, 7 }
  0x7f   : > { %786 = vmatpush2.bf16.msra.mxu0 %v1412_v43  ;;  %v297_v43 = vld [vmem:[%s1793_s18 + $0xc0] sm:$0xff] }
  0x80   : > { %899 = vmatpush2.bf16.msra.mxu1 %v1413_v44  ;;  %787 = vmatprep.subr.bf16.mxu0 %v1414_v45  ;;  %v301_v44 = vld [vmem:[%s1793_s18 + $0xe0] sm:$0xff]  ;;  %v299_v45 = vld [vmem:[%s1793_s18 + $0xd0] sm:$0xff]  ;;  %v1867_v35 = vsub.s32 0, %v436_v34  ;;  %v441_v37 = vsub.s32 1, %v436_v34 }
  0x81   : > { %900 = vmatprep.subr.bf16.mxu1 %v1416_v46  ;;  %v303_v46 = vld [vmem:[%s1793_s18 + $0xf0] sm:$0xff] }
  0x82   : > { %v1873_v38 = vrot.slane %v433_v36, %v1867_v35 }
  0x83   : > { %788 = vmatpush2.bf16.msra.mxu0 %v1418_v51  ;;  %v349_v51 = vpack.c.bf16 %v301_v44, %v297_v43 }
  0x84   : > { %901 = vmatpush2.bf16.msra.mxu1 %v1419_v52  ;;  %789 = vmatprep.subr.bf16.mxu0 %v1420_v55  ;;  %v351_v52 = vpack.c.bf16 %v303_v46, %v299_v45  ;;  %v305_v55 = vld [vmem:[%s1793_s18 + $0x100] sm:$0xff] }
  0x85   : > { %902 = vmatprep.subr.bf16.mxu1 %v1422_v56  ;;  %v309_v56 = vld [vmem:[%s1793_s18 + $0x120] sm:$0xff] }
  0x87   : > { %790 = vmatpush2.bf16.msra.mxu0 %v1424_v57  ;;  %v307_v57 = vld [vmem:[%s1793_s18 + $0x110] sm:$0xff] }
  0x88   : > { %903 = vmatpush2.bf16.msra.mxu1 %v1425_v58  ;;  %791 = vmatprep.subr.bf16.mxu0 %v1426_v59  ;;  %v311_v58 = vld [vmem:[%s1793_s18 + $0x130] sm:$0xff]  ;;  %v314_v59 = vld [vmem:[%s1793_s18 + $0x148] sm:$0xff] }
  0x89   : > { %904 = vmatprep.subr.bf16.mxu1 %v1428_v60  ;;  %v318_v60 = vld [vmem:[%s1793_s18 + $0x168] sm:$0xff] }
  0x8b   : > { %792 = vmatpush2.bf16.msra.mxu0 %v1430_v61  ;;  %v316_v61 = vld [vmem:[%s1793_s18 + $0x158] sm:$0xff] }
  0x8c   : > { %905 = vmatpush2.bf16.msra.mxu1 %v1431_v62  ;;  %793 = vmatprep.subr.bf16.mxu0 %v1432_v63  ;;  %v320_v62 = vld [vmem:[%s1793_s18 + $0x178] sm:$0xff]  ;;  %v353_v63 = vpack.c.bf16 %v309_v56, %v305_v55 }
  0x8d   : > { %906 = vmatprep.subr.bf16.mxu1 %v1434_v0  ;;  %v355_v0 = vpack.c.bf16 %v311_v58, %v307_v57 }
  0x8f   : > { %794 = vmatpush2.bf16.msra.mxu0 %v1436_v1  ;;  %v358_v1 = vpack.c.bf16 %v318_v60, %v314_v59 }
  0x90   : > { %907 = vmatpush2.bf16.msra.mxu1 %v1437_v2  ;;  %795 = vmatprep.subr.bf16.mxu0 %v1438_v3  ;;  %v360_v2 = vpack.c.bf16 %v320_v62, %v316_v61  ;;  %v313_v3 = vld [vmem:[%s1793_s18 + $0x140] sm:$0xff] }
  0x91   : > { %908 = vmatprep.subr.bf16.mxu1 %v1440_v4  ;;  %v317_v4 = vld [vmem:[%s1793_s18 + $0x160] sm:$0xff] }
  0x92   : > { %v357_v11 = vpack.c.bf16 %v317_v4, %v313_v3  ;;  %v1899_v3 = vld [vmem:[%s2037_s3] sm:$0x3] }
  0x93   : > { %796 = vmatpush2.bf16.msra.mxu0 %v1442_v5  ;;  %v315_v5 = vld [vmem:[%s1793_s18 + $0x150] sm:$0xff] }
  0x94   : > { %909 = vmatpush2.bf16.msra.mxu1 %v1443_v6  ;;  %v319_v6 = vld [vmem:[%s1793_s18 + $0x170] sm:$0xff] }
  0x95   : > { %v359_v12 = vpack.c.bf16 %v319_v6, %v315_v5  ;;  %v1042_v6 = vrot.slane %v1899_v3, %v441_v37 }
  0x96   : > { %798 = vmatmul.mubr.bf16.vlgmr.msra.gmra.mxu0 %v337_v15  ;;  %v321_v15 = vld [vmem:[%s1793_s18 + $0x180] sm:$0xff] }
  0x97   : > { %911 = vmatmul.mubr.bf16.vlgmr.msra.gmra.mxu1 %v339_v16  ;;  %807 = vmatprep.mubr.bf16.mxu0 %v342_v17  ;;  %v325_v16 = vld [vmem:[%s1793_s18 + $0x1a0] sm:$0xff]  ;;  %v323_v17 = vld [vmem:[%s1793_s18 + $0x190] sm:$0xff] }
  0x98   : > { %920 = vmatprep.mubr.bf16.mxu1 %v344_v18  ;;  %v327_v18 = vld [vmem:[%s1793_s18 + $0x1b0] sm:$0xff]  ;;  %v361_v23 = vpack.c.bf16 %v325_v16, %v321_v15  ;;  %v1636_v16 = vmov 0  }
  0x99   : > { %v363_v24 = vpack.c.bf16 %v327_v18, %v323_v17  ;;  %1347 = vset.pattern.permute.xlu0 %v1636_v16 }
  0x9e   : > { %808 = vmatmul.mubr.bf16.gmra.mxu0 %v341_v27  ;;  %v329_v27 = vld [vmem:[%s1793_s18 + $0x1c0] sm:$0xff] }
  0x9f   : > { %921 = vmatmul.mubr.bf16.gmra.mxu1 %v343_v28  ;;  %817 = vmatprep.mubr.bf16.mxu0 %v346_v29  ;;  %v333_v28 = vld [vmem:[%s1793_s18 + $0x1e0] sm:$0xff]  ;;  %v331_v29 = vld [vmem:[%s1793_s18 + $0x1d0] sm:$0xff] }
  0xa0   : > { %930 = vmatprep.mubr.bf16.mxu1 %v348_v30  ;;  %v335_v30 = vld [vmem:[%s1793_s18 + $0x1f0] sm:$0xff]  ;;  %v365_v31 = vpack.c.bf16 %v333_v28, %v329_v27 }
  0xa1   : > { %v367_v32 = vpack.c.bf16 %v335_v30, %v331_v29 }
  0xa6   : > { %818 = vmatmul.mubr.bf16.gmra.mxu0 %v345_v39  ;;  %v1875_v39 = vrot.slane %v433_v36, %v441_v37 }
  0xa7   : > { %931 = vmatmul.mubr.bf16.gmra.mxu1 %v347_v40  ;;  %827 = vmatprep.mubr.bf16.mxu0 %v350_v41 }
  0xa8   : > { %940 = vmatprep.mubr.bf16.mxu1 %v352_v42 }
  0xae   : > { %828 = vmatmul.mubr.bf16.gmra.mxu0 %v349_v51 }
  0xaf   : > { %941 = vmatmul.mubr.bf16.gmra.mxu1 %v351_v52  ;;  %837 = vmatprep.mubr.bf16.mxu0 %v354_v53 }
  0xb0   : > { %950 = vmatprep.mubr.bf16.mxu1 %v356_v54 }
  0xb6   : > { %838 = vmatmul.mubr.bf16.gmra.mxu0 %v353_v63 }
  0xb7   : > { %951 = vmatmul.mubr.bf16.gmra.mxu1 %v355_v0  ;;  %847 = vmatprep.mubr.bf16.mxu0 %v358_v1 }
  0xb8   : > { %960 = vmatprep.mubr.bf16.mxu1 %v360_v2 }
  0xbe   : > { %848 = vmatmul.mubr.bf16.gmra.mxu0 %v357_v11 }
  0xbf   : > { %961 = vmatmul.mubr.bf16.gmra.mxu1 %v359_v12  ;;  %857 = vmatprep.mubr.bf16.mxu0 %v362_v13  ;;  %v1024_v13 = vld [vmem:[#allocation2] sm:$0x1] }
  0xc0   : > { %970 = vmatprep.mubr.bf16.mxu1 %v364_v14  ;;  %1027 = vperm.xlu0 %1347, %v1024_v13  }
  0xc6   : > { %858 = vmatmul.mubr.bf16.gmra.mxu0 %v361_v23 }
  0xc7   : > { %971 = vmatmul.mubr.bf16.gmra.mxu1 %v363_v24  ;;  %867 = vmatprep.mubr.bf16.mxu0 %v366_v25 }
  0xc8   : > { %980 = vmatprep.mubr.bf16.mxu1 %v368_v26 }
  0xce   : > { %868 = vmatmul.mubr.bf16.gmra.mxu0 %v365_v31 }
  0xcf   : > { %981 = vmatmul.mubr.bf16.gmra.mxu1 %v367_v32  ;;  %1109 = vmatprep.mubr.f32.mxu0 %v1042_v6 }
 0x156   : > { %v799_v40 = vpop.f32.mrf.mxu0 }
 0x157   : > { %v912_v41 = vpop.f32.mrf.mxu1  ;;  %v800_v42 = vadd.f32 %v799_v40, %v1873_v38 }
 0x158   : > { %v801_v43 = vpop.f32.mrf.mxu0 }
 0x159   : > { %v914_v44 = vpop.f32.mrf.mxu1  ;;  %v1878_v45 = vadd.f32 %v912_v41, %v800_v42  ;;  %v802_v46 = vadd.f32 %v801_v43, %v1875_v39 }
 0x15a   : > { %v803_v47 = vpop.f32.mrf.mxu0 }
 0x15b   : > { %v916_v48 = vpop.f32.mrf.mxu1  ;;  %v1881_v49 = vadd.f32 %v914_v44, %v802_v46  ;;  %v804_v50 = vadd.f32 %v803_v47, %v1873_v38 }
 0x15c   : > { %v805_v51 = vpop.f32.mrf.mxu0 }
 0x15d   : > { %v918_v52 = vpop.f32.mrf.mxu1  ;;  %v1884_v53 = vadd.f32 %v916_v48, %v804_v50  ;;  %v806_v54 = vadd.f32 %v805_v51, %v1875_v39 }
 0x15e   : > { %v809_v55 = vpop.f32.mrf.mxu0 }
 0x15f   : > { %v922_v56 = vpop.f32.mrf.mxu1  ;;  %v1887_v57 = vadd.f32 %v918_v52, %v806_v54  ;;  %v810_v58 = vadd.f32 %v809_v55, %v1873_v38 }
 0x160   : > { %v811_v59 = vpop.f32.mrf.mxu0 }
 0x161   : > { %v924_v60 = vpop.f32.mrf.mxu1  ;;  %v1890_v61 = vadd.f32 %v922_v56, %v810_v58  ;;  %v812_v62 = vadd.f32 %v811_v59, %v1875_v39 }
 0x162   : > { %v813_v63 = vpop.f32.mrf.mxu0 }
 0x163   : > { %v926_v0 = vpop.f32.mrf.mxu1  ;;  %v1893_v1 = vadd.f32 %v924_v60, %v812_v62  ;;  %v814_v2 = vadd.f32 %v813_v63, %v1873_v38 }
 0x164   : > { %v815_v4 = vpop.f32.mrf.mxu0 }
 0x165   : > { %v928_v5 = vpop.f32.mrf.mxu1  ;;  %v1902_v7 = vadd.f32 %v926_v0, %v814_v2  ;;  %v816_v8 = vadd.f32 %v815_v4, %v1875_v39 }
 0x166   : > { %v819_v9 = vpop.f32.mrf.mxu0 }
 0x167   : > { %v932_v10 = vpop.f32.mrf.mxu1  ;;  %v1905_v11 = vadd.f32 %v928_v5, %v816_v8  ;;  %v820_v12 = vadd.f32 %v819_v9, %v1873_v38 }
 0x168   : > { %v821_v14 = vpop.f32.mrf.mxu0 }
 0x169   : > { %v934_v15 = vpop.f32.mrf.mxu1  ;;  %v1908_v17 = vadd.f32 %v932_v10, %v820_v12  ;;  %v822_v18 = vadd.f32 %v821_v14, %v1875_v39 }
 0x16a   : > { %v823_v19 = vpop.f32.mrf.mxu0 }
 0x16b   : > { %v936_v20 = vpop.f32.mrf.mxu1  ;;  %v1911_v21 = vadd.f32 %v934_v15, %v822_v18  ;;  %v824_v22 = vadd.f32 %v823_v19, %v1873_v38 }
 0x16c   : > { %v825_v23 = vpop.f32.mrf.mxu0 }
 0x16d   : > { %v938_v24 = vpop.f32.mrf.mxu1  ;;  %v1914_v25 = vadd.f32 %v936_v20, %v824_v22  ;;  %v826_v26 = vadd.f32 %v825_v23, %v1875_v39 }
 0x16e   : > { %v829_v27 = vpop.f32.mrf.mxu0 }
 0x16f   : > { %v942_v28 = vpop.f32.mrf.mxu1  ;;  %v1917_v29 = vadd.f32 %v938_v24, %v826_v26  ;;  %v830_v30 = vadd.f32 %v829_v27, %v1873_v38 }
 0x170   : > { %v831_v31 = vpop.f32.mrf.mxu0 }
 0x171   : > { %v944_v32 = vpop.f32.mrf.mxu1  ;;  %v1920_v33 = vadd.f32 %v942_v28, %v830_v30  ;;  %v832_v34 = vadd.f32 %v831_v31, %v1875_v39 }
 0x172   : > { %v833_v36 = vpop.f32.mrf.mxu0 }
 0x173   : > { %v946_v37 = vpop.f32.mrf.mxu1  ;;  %v1923_v40 = vadd.f32 %v944_v32, %v832_v34  ;;  %v834_v41 = vadd.f32 %v833_v36, %v1873_v38 }
 0x174   : > { %v1926_v42 = vpop.f32.mrf.mxu0 }
 0x175   : > { %v1928_v43 = vpop.f32.mrf.mxu1  ;;  %v1930_v44 = vadd.f32 %v946_v37, %v834_v41 }
 0x176   : > { %v1932_v46 = vpop.f32.mrf.mxu0 }
 0x177   : > { %v1934_v47 = vpop.f32.mrf.mxu1 }
 0x178   : > { %v1936_v48 = vpop.f32.mrf.mxu0 }
 0x179   : > { %v1938_v50 = vpop.f32.mrf.mxu1 }
 0x17a   : > { %v1940_v51 = vpop.f32.mrf.mxu0 }
 0x17b   : > { %v1942_v52 = vpop.f32.mrf.mxu1 }
 0x17c   : > { %v845_v54 = vpop.f32.mrf.mxu0 }
 0x17d   : > { %v1944_v55 = vpop.f32.mrf.mxu1 }
 0x17e   : > { %v849_v56 = vpop.f32.mrf.mxu0 }
 0x17f   : > { %v1946_v58 = vpop.f32.mrf.mxu1 }
 0x180   : > { %v851_v59 = vpop.f32.mrf.mxu0 }
 0x181   : > { %v964_v60 = vpop.f32.mrf.mxu1 }
 0x182   : > { %v853_v62 = vpop.f32.mrf.mxu0 }
 0x183   : > { %v966_v63 = vpop.f32.mrf.mxu1 }
 0x184   : > { %v855_v0 = vpop.f32.mrf.mxu0 }
 0x185   : > { %v968_v2 = vpop.f32.mrf.mxu1 }
 0x186   : > { %v859_v4 = vpop.f32.mrf.mxu0 }
 0x187   : > { %v972_v5 = vpop.f32.mrf.mxu1 }
 0x188   : > { %v861_v6 = vpop.f32.mrf.mxu0 }
 0x189   : > { %v974_v8 = vpop.f32.mrf.mxu1  ;;  %v862_v41 = vadd.f32 %v861_v6, %v1875_v39  ;;  %v850_v6 = vadd.f32 %v849_v56, %v1873_v38  ;;  %v842_v56 = vadd.f32 %v1936_v48, %v1875_v39 }
 0x18a   : > { %v863_v9 = vpop.f32.mrf.mxu0 }
 0x18b   : > { %v976_v10 = vpop.f32.mrf.mxu1  ;;  %v864_v36 = vadd.f32 %v863_v9, %v1873_v38  ;;  %v852_v9 = vadd.f32 %v851_v59, %v1875_v39  ;;  %v963_v59 = vadd.f32 %v1946_v58, %v850_v6  ;;  %v836_v58 = vadd.f32 %v1926_v42, %v1875_v39 }
 0x18c   : > { %v865_v12 = vpop.f32.mrf.mxu0 }
 0x18d   : > { %v978_v13 = vpop.f32.mrf.mxu1  ;;  %v866_v31 = vadd.f32 %v865_v12, %v1875_v39  ;;  %v854_v12 = vadd.f32 %v853_v62, %v1873_v38  ;;  %v844_v62 = vadd.f32 %v1940_v51, %v1873_v38 }
 0x18e   : > { %v869_v14 = vpop.f32.mrf.mxu0 }
 0x18f   : > { %v982_v15 = vpop.f32.mrf.mxu1  ;;  %v870_v27 = vadd.f32 %v869_v14, %v1873_v38  ;;  %v856_v14 = vadd.f32 %v855_v0, %v1875_v39 }
 0x190   : > { %v871_v16 = vpop.f32.mrf.mxu0 }
 0x191   : > { %v984_v18 = vpop.f32.mrf.mxu1  ;;  %v872_v22 = vadd.f32 %v871_v16, %v1875_v39  ;;  %v983_v37 = vadd.f32 %v982_v15, %v870_v27  ;;  %v979_v16 = vadd.f32 %v978_v13, %v866_v31  ;;  %v969_v15 = vadd.f32 %v968_v2, %v856_v14 }
 0x192   : > { %v873_v19 = vpop.f32.mrf.mxu0  ;;  %v967_v13 = vadd.f32 %v966_v63, %v854_v12  ;;  %v949_v27 = vadd.f32 %v1928_v43, %v836_v58  ;;  %v1038_v31 = vrot.slane %v1899_v3, %v1867_v35 }
 0x193   : > { %v986_v20 = vpop.f32.mrf.mxu1  ;;  %v874_v23 = vadd.f32 %v873_v19, %v1873_v38  ;;  %v985_v32 = vadd.f32 %v984_v18, %v872_v22  ;;  %v860_v19 = vadd.f32 %v859_v4, %v1873_v38 }
 0x194   : > { %v875_v24 = vpop.f32.mrf.mxu0 }
 0x195   : > { %v876_v26 = vadd.f32 %v875_v24, %v1875_v39  ;;  %v987_v28 = vadd.f32 %v986_v20, %v874_v23  ;;  %v988_v30 = vpop.f32.mrf.mxu1  ;;  %v977_v24 = vadd.f32 %v976_v10, %v864_v36  ;;  %v975_v20 = vadd.f32 %v974_v8, %v862_v41 }
 0x196   : > { %v973_v18 = vadd.f32 %v972_v5, %v860_v19  ;;  %v846_v10 = vadd.f32 %v845_v54, %v1875_v39  ;;  %v965_v23 = vadd.f32 %v964_v60, %v852_v9  ;;  %v840_v60 = vadd.f32 %v1932_v46, %v1873_v38 }
 0x197   : > { %v989_v34 = vadd.f32 %v988_v30, %v876_v26  ;;  %v957_v5 = vadd.f32 %v1942_v52, %v844_v62  ;;  %v955_v8 = vadd.f32 %v1938_v50, %v842_v56 }
 0x198   : > { %v959_v63 = vadd.f32 %v1944_v55, %v846_v10  ;;  %v953_v55 = vadd.f32 %v1934_v47, %v840_v60 }
 0x199   : > { %1444 = vtanh.f32 %v989_v34 }
 0x19a   : > { %1446 = vtanh.f32 %v987_v28 }
 0x19b   : > { %1448 = vtanh.f32 %v985_v32 }
 0x19c   : > { %1450 = vtanh.f32 %v983_v37 }
 0x19d   : > { %1452 = vtanh.f32 %v979_v16 }
 0x19e   : > { %1454 = vtanh.f32 %v977_v24 }
 0x19f   : > { %1456 = vtanh.f32 %v975_v20 }
 0x1a0   : > { %1458 = vtanh.f32 %v973_v18 }
 0x1a1   : > { %1460 = vtanh.f32 %v969_v15 }
 0x1a2   : > { %1462 = vtanh.f32 %v967_v13 }
 0x1a3   : > { %1464 = vtanh.f32 %v965_v23 }
 0x1a4   : > { %1466 = vtanh.f32 %v963_v59 }
 0x1a5   : > { %1468 = vtanh.f32 %v959_v63 }
 0x1a6   : > { %v1445_v22 = vpop.eup %1444  ;;  %1470 = vtanh.f32 %v957_v5 }
 0x1a7   : > { %v1447_v4 = vpop.eup %1446  ;;  %1045 = vmatprep.subr.mxu0 %v1445_v22  ;;  %1472 = vtanh.f32 %v955_v8 }
 0x1a8   : > { %v1449_v0 = vpop.eup %1448  ;;  %1046 = vmatpush1.xpose.msra.mxu0 %v1447_v4  ;;  %1474 = vtanh.f32 %v953_v55 }
 0x1a9   : > { %1047 = vmatprep.subr.mxu0 %v1449_v0  ;;  %v1451_v2 = vpop.eup %1450  ;;  %1476 = vtanh.f32 %v949_v27 }
 0x1aa   : > { %v1453_v54 = vpop.eup %1452  ;;  %1478 = vtanh.f32 %v1930_v44 }
 0x1ab   : > { %v1455_v51 = vpop.eup %1454  ;;  %1480 = vtanh.f32 %v1923_v40 }
 0x1ac   : > { %1048 = vmatpush1.xpose.msra.mxu0 %v1451_v2  ;;  %v1457_v48 = vpop.eup %1456  ;;  %1482 = vtanh.f32 %v1920_v33 }
 0x1ad   : > { %1049 = vmatprep.subr.mxu0 %v1453_v54  ;;  %v1459_v26 = vpop.eup %1458  ;;  %1484 = vtanh.f32 %v1917_v29 }
 0x1ae   : > { %v1461_v38 = vpop.eup %1460  ;;  %1486 = vtanh.f32 %v1914_v25 }
 0x1af   : > { %v1463_v46 = vpop.eup %1462  ;;  %1488 = vtanh.f32 %v1911_v21 }
 0x1b0   : > { %1050 = vmatpush1.xpose.msra.mxu0 %v1455_v51  ;;  %v1465_v39 = vpop.eup %1464  ;;  %1490 = vtanh.f32 %v1908_v17 }
 0x1b1   : > { %1051 = vmatprep.subr.mxu0 %v1457_v48  ;;  %v1467_v42 = vpop.eup %1466  ;;  %1492 = vtanh.f32 %v1905_v11 }
 0x1b2   : > { %v1469_v47 = vpop.eup %1468  ;;  %1494 = vtanh.f32 %v1902_v7 }
 0x1b3   : > { %v1471_v43 = vpop.eup %1470  ;;  %1496 = vtanh.f32 %v1893_v1 }
 0x1b4   : > { %1052 = vmatpush1.xpose.msra.mxu0 %v1459_v26  ;;  %v1473_v50 = vpop.eup %1472  ;;  %1498 = vtanh.f32 %v1890_v61 }
 0x1b5   : > { %1053 = vmatprep.subr.mxu0 %v1461_v38  ;;  %v1475_v52 = vpop.eup %1474  ;;  %1500 = vtanh.f32 %v1887_v57 }
 0x1b6   : > { %v1477_v44 = vpop.eup %1476  ;;  %1502 = vtanh.f32 %v1884_v53 }
 0x1b7   : > { %v1479_v40 = vpop.eup %1478  ;;  %1504 = vtanh.f32 %v1881_v49 }
 0x1b8   : > { %1054 = vmatpush1.xpose.msra.mxu0 %v1463_v46  ;;  %v1481_v33 = vpop.eup %1480  ;;  %1506 = vtanh.f32 %v1878_v45  ;;  %v1028_v45 = vpop.permute.xlu0 %1027 }
 0x1b9   : > { %1055 = vmatprep.subr.mxu0 %v1465_v39  ;;  %v1483_v29 = vpop.eup %1482  ;;  %v1033_v32 = vrot.slane %v1028_v45, %v1867_v35 }
 0x1ba   : > { %v1485_v25 = vpop.eup %1484 }
 0x1bb   : > { %v1487_v21 = vpop.eup %1486 }
 0x1bc   : > { %1056 = vmatpush1.xpose.msra.mxu0 %v1467_v42  ;;  %v1489_v17 = vpop.eup %1488 }
 0x1bd   : > { %1057 = vmatprep.subr.mxu0 %v1469_v47  ;;  %v1491_v11 = vpop.eup %1490 }
 0x1be   : > { %v1493_v7 = vpop.eup %1492 }
 0x1bf   : > { %v1495_v1 = vpop.eup %1494 }
 0x1c0   : > { %1058 = vmatpush1.xpose.msra.mxu0 %v1471_v43  ;;  %v1497_v28 = vpop.eup %1496 }
 0x1c1   : > { %1059 = vmatprep.subr.mxu0 %v1473_v50  ;;  %v1499_v57 = vpop.eup %1498 }
 0x1c2   : > { %v1501_v61 = vpop.eup %1500 }
 0x1c3   : > { %v1503_v30 = vpop.eup %1502 }
 0x1c4   : > { %1060 = vmatpush1.xpose.msra.mxu0 %v1475_v52  ;;  %v1505_v53 = vpop.eup %1504 }
 0x1c5   : > { %1061 = vmatprep.subr.mxu0 %v1477_v44  ;;  %v1507_v49 = vpop.eup %1506 }
 0x1c8   : > { %1062 = vmatpush1.xpose.msra.mxu0 %v1479_v40 }
 0x1c9   : > { %1063 = vmatprep.subr.mxu0 %v1481_v33 }
 0x1cc   : > { %1064 = vmatpush1.xpose.msra.mxu0 %v1483_v29 }
 0x1cd   : > { %1065 = vmatprep.subr.mxu0 %v1485_v25 }
 0x1d0   : > { %1066 = vmatpush1.xpose.msra.mxu0 %v1487_v21 }
 0x1d1   : > { %1067 = vmatprep.subr.mxu0 %v1489_v17 }
 0x1d4   : > { %1068 = vmatpush1.xpose.msra.mxu0 %v1491_v11 }
 0x1d5   : > { %1069 = vmatprep.subr.mxu0 %v1493_v7 }
 0x1d8   : > { %1070 = vmatpush1.xpose.msra.mxu0 %v1495_v1 }
 0x1d9   : > { %1071 = vmatprep.subr.mxu0 %v1497_v28 }
 0x1dc   : > { %1072 = vmatpush1.xpose.msra.mxu0 %v1499_v57 }
 0x1dd   : > { %1073 = vmatprep.subr.mxu0 %v1501_v61 }
 0x1e0   : > { %1074 = vmatpush1.xpose.msra.mxu0 %v1503_v30 }
 0x1e1   : > { %1075 = vmatprep.subr.mxu0 %v1505_v53 }
 0x1e4   : > { %1076 = vmatpush1.xpose.msra.mxu0 %v1507_v49 }
 0x1e7   : > { %1110 = vmatmul.mubr.f32.vlgmr.msra.gmra.mxu0 %v1038_v31 }
 0x2a7   : > { %v1111_v34 = vpop.f32.mrf.mxu0 }
 0x2a8   : > { %v1112_v36 = vadd.f32 %v1111_v34, %v1033_v32 }
 0x2a9   : > { %v1113_v37 = vpop.f32.mrf.mxu0 }
 0x2aa   : > { %1115 = vst [vmem:[%s266_s13] sm:$0x1] %v1112_v36 }
 0x2ab   : > { %1573 = shalt.err (!%p1570_p9)
}
 0x2ac   : > { %s1574_s17 = scalar_lea.hbm %s1998_s29, 16  ;;  %s1578_s30 = scalar_lea.hbm %s2039_s5, 48 }
 0x2ad   : > { %p1575_p10 = scmp.ne.s32.totalorder %s1998_s29, %s1574_s17  ;;  %p1579_p12 = scmp.lt.s32.totalorder %s1998_s29, %s2039_s5 }
 0x2ae   : > { %p1580_p2 = scmp.lt.s32.totalorder %s1578_s30, %s1574_s17 }
 0x2af   : > { %p1576_p6 = pnand %p1575_p10, %p2048_p13 }
 0x2b0   : > { %p1581_p1 = por %p1580_p2, %p1579_p12 }
 0x2b1   : > { %p1577_p11 = pneg %p1576_p6 }
 0x2b3   : > { %p1582_p4 = pnand %p1581_p1, %p1577_p11 }
 0x2b5   : > { %1585 = shalt.err (!%p1582_p4)
}
 0x2b6   : > { %1296 = dma.vmem_to_hbm [thread:$0]  (%p2048_p13), %s1130_s19, 16, %s1998_s29, %s1117_s10  }
 0x2b7 PF: > { %p1308_p5 = scmp.ge.s32.totalorder %s1628_s23, 2  ;;  %s1141_s27 = sand.u32 1, %s1616_s20  }
 0x2b8   : > { %p2049_p0 = scmp.ne.s32.totalorder %s2045_s7, 0  ;;  %s1142_s12 = scalar_lea.sflag [#allocation5], %s1141_s27 }
 0x2ba   : > { %p1303_p7 = pnand %p1308_p5, %p2049_p0 }
 0x2bc   : > { %p1304_p3 = pneg %p1303_p7 }
 0x2be   : > { %1611 = dma.done.wait (%p1304_p3), %s1142_s12, 16  }
 0x2bf   : > { %1613 = vsyncadd (%p1304_p3), %s1142_s12, 4294967280  ;;  %p21_p8 = scmp.ge.s32.totalorder %s1696_s25, 5   ;;  %s2050_s20 = smov %s1620_s21 }
 0x2c0   : > { %s2051_s21 = smov %s1624_s22  ;;  %s2052_s22 = smov %s1708_s28 }
 0x2c1   : > { %s2053_s23 = smov %s1696_s25  ;;  %23 = sbr.rel (!%p21_p8) target bundleno = 9 (0x9), region = 89 }
 0x2c6   :  { %1146 = vsyncpa [#allocation4], 1 }
 0x2c7   :  { %1148 = vsyncpa [#allocation4 + $0x1], 1 }
 0x2c8   :  { %1149 = vsyncpa [#allocation7], 1 }
 0x2c9   :  { %1150 = vsyncpa [#allocation5], 1 }
 0x2ca   :  { %1152 = vsyncpa [#allocation5 + $0x1], 1 }

</bundles_post_ra>
